<compile_context>
chip_gen: v7x
topology: tpu7x:2x2x1
jax: 0.10.0
libtpu: 0.0.40
codegen_flags: <defaults>
</compile_context>

<pallas_src>
import functools
import math

import jax
import jax.numpy as jnp
from jax.experimental import pallas as pl
from jax.experimental.pallas import tpu as pltpu


# --------------------------------------------------------------------------
# Kernels
# --------------------------------------------------------------------------

def _aaca_fused_kernel(x_ref, w1_ref, b1_ref, w2_ref, b2_ref, o_ref):
    """Single-pass: pool + gate + broadcast multiply for one batch block."""
    x = x_ref[...]                                        # (Nb, C, HW), native dtype
    # Global average pool: f32-accumulated sum over the lane axis.
    # The 1/(H*W) scale is folded into w1_ref, so this is the only f32 use on
    # the full tile (no materialized f32 copy is kept around).
    s = jnp.sum(x.astype(jnp.float32), axis=-1)           # (Nb, C)
    # Effective Conv1d #1 (dilated conv on L==1 -> matmul) + bias + ReLU
    h = jnp.dot(s, w1_ref[...], preferred_element_type=jnp.float32) + b1_ref[...]
    h = jnp.maximum(h, 0.0)
    # Effective Conv1d #2 + bias; residual folded in: gate' = sigmoid(g) + 1
    g = jnp.dot(h, w2_ref[...], preferred_element_type=jnp.float32) + b2_ref[...]
    g1 = (jax.nn.sigmoid(g) + 1.0).astype(x.dtype)        # (Nb, C)
    # out = x * g + x == x * (g + 1); multiply in the input dtype, gate
    # broadcast over the lane (spatial) axis.
    o_ref[...] = (x * g1[:, :, None]).astype(o_ref.dtype)


def _pool_kernel(x_ref, s_ref, *, hw, thw, need_mask):
    """Two-phase pass 1: pooled f32 sum accumulated over HW tiles."""
    t = pl.program_id(1)

    @pl.when(t == 0)
    def _():
        s_ref[...] = jnp.zeros_like(s_ref)

    x = x_ref[...]                                        # (1, C, THW)
    if need_mask:
        # Mask the out-of-bounds tail of the last HW tile (zeros don't perturb
        # the pooled sum).
        idx = t * thw + jax.lax.broadcasted_iota(jnp.int32, x.shape, 2)
        x = jnp.where(idx < hw, x, jnp.zeros_like(x))
    s_ref[...] += jnp.sum(x.astype(jnp.float32), axis=-1, keepdims=True)


def _gate_kernel(x_ref, g_ref, o_ref):
    """Two-phase pass 2: broadcast gating multiply in the input dtype."""
    o_ref[...] = (x_ref[...] * g_ref[...]).astype(o_ref.dtype)


# --------------------------------------------------------------------------
# Host-side glue
# --------------------------------------------------------------------------

def _effective_conv1d_weight(w, k, r):
    """Collapse the dilated Conv1d (length-1 input, padding=r, dilation=r) into
    an equivalent dense (C_in, C_out) matrix: only the tap hitting the single
    real (non-padded) sample contributes."""
    c_out, c_in, _ = w.shape
    w_eff = jnp.zeros((c_out, c_in), jnp.float32)
    for j in range(k):
        # real sample sits at padded index r; tap j lands at index j*r
        if j * r == r:
            w_eff = w_eff + w[:, :, j].astype(jnp.float32)
    return w_eff.T  # (C_in, C_out) so the kernel computes s @ w_eff


def _vmem_capacity_bytes():
    try:
        cap = int(pltpu.get_tpu_info().vmem_capacity_bytes)
        if cap > 0:
            return cap
    except Exception:
        pass
    return 64 << 20  # conservative fallback (v7x per-TensorCore VMEM)


def aaca_forward(x, w1, b1, w2, b2, k, *, _force_block_budget=None):
    N, C, H, W = x.shape
    HW = H * W
    r = (k + 1) // 2
    # Dilated-Conv1d output length on the padded length-1 sequence must be 1,
    # which only holds for k == 3.
    assert 1 + 2 * r - r * (k - 1) == 1, "AACA Pallas kernel supports k == 3 only"

    # Effective (C_in, C_out) weights; fold the 1/(H*W) pooling scale into w1.
    w1_eff = _effective_conv1d_weight(w1, k, r) * (1.0 / float(HW))
    w2_eff = _effective_conv1d_weight(w2, k, r)
    b1_f = b1.astype(jnp.float32).reshape(1, C)
    b2_f = b2.astype(jnp.float32).reshape(1, C)

    # Channels on the sublane axis, flattened spatial on the lane (fast) axis.
    x_flat = x.reshape(N, C, HW)
    itemsize = jnp.dtype(x.dtype).itemsize
    bytes_per_batch = C * HW * itemsize
    weight_bytes = 2 * C * C * 4 + 2 * C * 4

    vmem_cap = _vmem_capacity_bytes()
    # in + out, double buffered (4 blocks) <= ~half of VMEM:
    # ~16 MiB blocks on 128 MiB chips (v5e/v6e), ~8 MiB on v7x (64 MiB).
    block_budget = _force_block_budget if _force_block_budget else max(vmem_cap // 8, 2 << 20)
    # Leave Mosaic internal scratch / semaphore headroom below physical VMEM.
    vmem_ceiling = max(vmem_cap - (12 << 20), 32 << 20)

    if bytes_per_batch <= block_budget:
        # ---------------- single-pass path ----------------
        nb = max(1, min(N, block_budget // bytes_per_batch))
        # Guarantee >= 2 grid steps when N >= 2 so both v7x TensorCores get
        # work (costs one ~0.35us step on single-TC chips -> negligible).
        nb = min(nb, max(1, (N + 1) // 2))
        grid = (pl.cdiv(N, nb),)  # tail block: OOB reads are garbage but row-local,
                                  # OOB writes are dropped by Pallas

        vmem_limit = int(min(
            max(4 * nb * bytes_per_batch + 2 * weight_bytes + (2 << 20), 16 << 20),
            vmem_ceiling))

        cost = pl.CostEstimate(
            flops=2 * N * C * HW + 4 * N * C * C,
            transcendentals=N * C,
            bytes_accessed=2 * N * C * HW * itemsize + weight_bytes,
        )

        out_flat = pl.pallas_call(
            _aaca_fused_kernel,
            out_shape=jax.ShapeDtypeStruct((N, C, HW), x.dtype),
            grid_spec=pltpu.PrefetchScalarGridSpec(
                num_scalar_prefetch=0,
                grid=grid,
                in_specs=[
                    # If a trace shows exposed input DMA, sweep
                    # pipeline_mode=pl.Buffered(3) on this spec only.
                    pl.BlockSpec((nb, C, HW), lambda n: (n, 0, 0)),
                    pl.BlockSpec((C, C), lambda n: (0, 0)),
                    pl.BlockSpec((1, C), lambda n: (0, 0)),
                    pl.BlockSpec((C, C), lambda n: (0, 0)),
                    pl.BlockSpec((1, C), lambda n: (0, 0)),
                ],
                out_specs=pl.BlockSpec((nb, C, HW), lambda n: (n, 0, 0)),
            ),
            compiler_params=pltpu.CompilerParams(
                dimension_semantics=("parallel",),
                vmem_limit_bytes=vmem_limit,
            ),
            cost_estimate=cost,
        )(x_flat, w1_eff, b1_f, w2_eff, b2_f)

        return out_flat.reshape(N, C, H, W)

    # ---------------- two-phase fallback (large C*HW) ----------------
    # HW tile: largest multiple of 128 whose (1, C, THW) slab fits the budget.
    thw = max(128, (block_budget // (C * itemsize)) // 128 * 128)
    thw = min(thw, HW)
    n_hw = pl.cdiv(HW, thw)
    need_mask = (HW % thw) != 0

    vmem_limit = int(min(max(4 * C * thw * itemsize + (2 << 20), 16 << 20),
                         vmem_ceiling))

    # Pass 1: pooled f32 sums, HW as the trailing 'arbitrary' (reduction) axis.
    pooled = pl.pallas_call(
        functools.partial(_pool_kernel, hw=HW, thw=thw, need_mask=need_mask),
        out_shape=jax.ShapeDtypeStruct((N, C, 1), jnp.float32),
        grid_spec=pltpu.PrefetchScalarGridSpec(
            num_scalar_prefetch=0,
            grid=(N, n_hw),
            in_specs=[pl.BlockSpec((1, C, thw), lambda n, t: (n, 0, t))],
            out_specs=pl.BlockSpec((1, C, 1), lambda n, t: (n, 0, 0)),
        ),
        compiler_params=pltpu.CompilerParams(
            dimension_semantics=("parallel", "arbitrary"),
            vmem_limit_bytes=vmem_limit,
        ),
        cost_estimate=pl.CostEstimate(
            flops=N * C * HW,
            transcendentals=0,
            bytes_accessed=N * C * HW * itemsize + N * C * 4,
        ),
    )(x_flat)

    # Tiny (C x C) gate math in plain-JAX glue (negligible vs. the x streaming).
    s = pooled.reshape(N, C)
    h = jax.nn.relu(jnp.dot(s, w1_eff, preferred_element_type=jnp.float32) + b1_f)
    g = jnp.dot(h, w2_eff, preferred_element_type=jnp.float32) + b2_f
    gate = (jax.nn.sigmoid(g) + 1.0).astype(x.dtype).reshape(N, C, 1)

    # Pass 2: broadcast gating multiply, both grid axes parallel (v7x 2 TCs).
    out_flat = pl.pallas_call(
        _gate_kernel,
        out_shape=jax.ShapeDtypeStruct((N, C, HW), x.dtype),
        grid_spec=pltpu.PrefetchScalarGridSpec(
            num_scalar_prefetch=0,
            grid=(N, n_hw),
            in_specs=[
                pl.BlockSpec((1, C, thw), lambda n, t: (n, 0, t)),
                pl.BlockSpec((1, C, 1), lambda n, t: (n, 0, 0)),
            ],
            out_specs=pl.BlockSpec((1, C, thw), lambda n, t: (n, 0, t)),
        ),
        compiler_params=pltpu.CompilerParams(
            dimension_semantics=("parallel", "parallel"),
            vmem_limit_bytes=vmem_limit,
        ),
        cost_estimate=pl.CostEstimate(
            flops=N * C * HW,
            transcendentals=0,
            bytes_accessed=2 * N * C * HW * itemsize + N * C * itemsize,
        ),
    )(x_flat, gate)

    return out_flat.reshape(N, C, H, W)


def aaca_reference(x, w1, b1, w2, b2, k):
    """Pure-JAX reference mirroring the PyTorch forward (exact for k == 3)."""
    r = (k + 1) // 2
    s = jnp.mean(x.astype(jnp.float32), axis=(2, 3))               # (N, C)
    we1 = _effective_conv1d_weight(w1, k, r)                       # (C_in, C_out)
    we2 = _effective_conv1d_weight(w2, k, r)
    h = jax.nn.relu(s @ we1 + b1)
    g = jax.nn.sigmoid(h @ we2 + b2)
    return (x * g[:, :, None, None] + x).astype(x.dtype)


if __name__ == "__main__":
    k = 3
    key = jax.random.PRNGKey(0)
    kx, kw1, kb1, kw2, kb2, kx2 = jax.random.split(key, 6)

    # Small shapes consistent with the module.
    N, C, H, W = 2, 4, 16, 16
    bound = 1.0 / math.sqrt(C * k)
    w1 = jax.random.uniform(kw1, (C, C, k), jnp.float32, -bound, bound)
    b1 = jax.random.uniform(kb1, (C,), jnp.float32, -bound, bound)
    w2 = jax.random.uniform(kw2, (C, C, k), jnp.float32, -bound, bound)
    b2 = jax.random.uniform(kb2, (C,), jnp.float32, -bound, bound)
    x = jax.random.normal(kx, (N, C, H, W), jnp.float32)

    # Single-pass (fused) path.
    out = jax.block_until_ready(aaca_forward(x, w1, b1, w2, b2, k))
    ref = aaca_reference(x, w1, b1, w2, b2, k)
    assert out.shape == (N, C, H, W)
    # The in-kernel f32 matmuls use the MXU's default precision, which may
    # differ slightly from the XLA reference dot; tolerance sized for that.
    assert jnp.allclose(out, ref, atol=1e-3, rtol=1e-3), \
        float(jnp.max(jnp.abs(out - ref)))

    # Exercise the large-C*HW two-phase fallback on a small shape by forcing a
    # tiny per-block budget (HW=400 also exercises the masked HW tail tile).
    H2 = W2 = 20
    x2 = jax.random.normal(kx2, (N, C, H2, W2), jnp.float32)
    out2 = jax.block_until_ready(
        aaca_forward(x2, w1, b1, w2, b2, k, _force_block_budget=4096))
    ref2 = aaca_reference(x2, w1, b1, w2, b2, k)
    assert out2.shape == (N, C, H2, W2)
    assert jnp.allclose(out2, ref2, atol=1e-3, rtol=1e-3), \
        float(jnp.max(jnp.abs(out2 - ref2)))

    print("KERNEL_OK")
</pallas_src>

<mosaic_0001>
module attributes {stable_mosaic.version = 11 : i64} {
  func.func @_aaca_fused_kernel(%arg0: i32, %arg1: memref<1x4x256xf32, #tpu.memory_space<vmem>>, %arg2: memref<4x4xf32, #tpu.memory_space<vmem>>, %arg3: memref<1x4xf32, #tpu.memory_space<vmem>>, %arg4: memref<4x4xf32, #tpu.memory_space<vmem>>, %arg5: memref<1x4xf32, #tpu.memory_space<vmem>>, %arg6: memref<1x4x256xf32, #tpu.memory_space<vmem>>) attributes {dimension_semantics = [#tpu.dimension_semantics<parallel>], iteration_bounds = array<i64: 2>, scalar_prefetch = 0 : i64, scratch_operands = 0 : i64, tpu.core_type = #tpu.core_type<tc>, window_params = [{transform_indices = @transform_0, window_bounds = array<i64: 1, 4, 256>}, {pipeline_mode = #tpu.pipeline_mode<synchronous>, transform_indices = @transform_1, window_bounds = array<i64: 4, 4>}, {pipeline_mode = #tpu.pipeline_mode<synchronous>, transform_indices = @transform_2, window_bounds = array<i64: 1, 4>}, {pipeline_mode = #tpu.pipeline_mode<synchronous>, transform_indices = @transform_3, window_bounds = array<i64: 4, 4>}, {pipeline_mode = #tpu.pipeline_mode<synchronous>, transform_indices = @transform_4, window_bounds = array<i64: 1, 4>}, {transform_indices = @transform_5, window_bounds = array<i64: 1, 4, 256>}]} {
    %c0 = arith.constant 0 : index
    %c0_0 = arith.constant 0 : index
    %c0_1 = arith.constant 0 : index
    %0 = vector.load %arg1[%c0, %c0_0, %c0_1] : memref<1x4x256xf32, #tpu.memory_space<vmem>>, vector<1x4x256xf32>
    %cst = arith.constant dense<0.000000e+00> : vector<1x4xf32>
    %1 = vector.multi_reduction <add>, %0, %cst [2] : vector<1x4x256xf32> to vector<1x4xf32>
    %c0_2 = arith.constant 0 : index
    %c0_3 = arith.constant 0 : index
    %2 = vector.load %arg2[%c0_2, %c0_3] : memref<4x4xf32, #tpu.memory_space<vmem>>, vector<4x4xf32>
    %cst_4 = arith.constant dense<0.000000e+00> : vector<1x4xf32>
    %3 = tpu.matmul %1, %2, %cst_4 {dimension_numbers = #tpu.dot_dimension_numbers<[1], [0], [0], [1], [0, 0, 1, 1], [], []>} : vector<1x4xf32>, vector<4x4xf32>, vector<1x4xf32> -> vector<1x4xf32>
    %c0_5 = arith.constant 0 : index
    %c0_6 = arith.constant 0 : index
    %4 = vector.load %arg3[%c0_5, %c0_6] : memref<1x4xf32, #tpu.memory_space<vmem>>, vector<1x4xf32>
    %5 = arith.addf %3, %4 : vector<1x4xf32>
    %cst_7 = arith.constant 0.000000e+00 : f32
    %6 = vector.broadcast %cst_7 : f32 to vector<1x4xf32>
    %7 = arith.maximumf %5, %6 : vector<1x4xf32>
    %c0_8 = arith.constant 0 : index
    %c0_9 = arith.constant 0 : index
    %8 = vector.load %arg4[%c0_8, %c0_9] : memref<4x4xf32, #tpu.memory_space<vmem>>, vector<4x4xf32>
    %cst_10 = arith.constant dense<0.000000e+00> : vector<1x4xf32>
    %9 = tpu.matmul %7, %8, %cst_10 {dimension_numbers = #tpu.dot_dimension_numbers<[1], [0], [0], [1], [0, 0, 1, 1], [], []>} : vector<1x4xf32>, vector<4x4xf32>, vector<1x4xf32> -> vector<1x4xf32>
    %c0_11 = arith.constant 0 : index
    %c0_12 = arith.constant 0 : index
    %10 = vector.load %arg5[%c0_11, %c0_12] : memref<1x4xf32, #tpu.memory_space<vmem>>, vector<1x4xf32>
    %11 = arith.addf %9, %10 : vector<1x4xf32>
    %12 = arith.negf %11 : vector<1x4xf32>
    %13 = math.exp %12 : vector<1x4xf32>
    %cst_13 = arith.constant 1.000000e+00 : f32
    %14 = vector.broadcast %cst_13 : f32 to vector<1x4xf32>
    %15 = arith.addf %14, %13 : vector<1x4xf32>
    %16 = arith.divf %14, %15 : vector<1x4xf32>
    %cst_14 = arith.constant 1.000000e+00 : f32
    %17 = vector.broadcast %cst_14 : f32 to vector<1x4xf32>
    %18 = arith.addf %16, %17 : vector<1x4xf32>
    %19 = vector.shape_cast %18 : vector<1x4xf32> to vector<1x4x1xf32>
    %20 = vector.broadcast %19 : vector<1x4x1xf32> to vector<1x4x256xf32>
    %21 = arith.mulf %0, %20 : vector<1x4x256xf32>
    %c0_15 = arith.constant 0 : index
    %c0_16 = arith.constant 0 : index
    %c0_17 = arith.constant 0 : index
    %22 = vector.load %arg6[%c0_15, %c0_16, %c0_17] : memref<1x4x256xf32, #tpu.memory_space<vmem>>, vector<1x4x256xf32>
    tpu.vector_store %arg6[%c0_15, %c0_16, %c0_17], %21 {strides = array<i32>} : memref<1x4x256xf32, #tpu.memory_space<vmem>>, vector<1x4x256xf32>,
    return
  }
  func.func @transform_0(%arg0: i32) -> (i32, i32, i32) {
    %c0_i32 = arith.constant 0 : i32
    %c0_i32_0 = arith.constant 0 : i32
    %c0_i32_1 = arith.constant 0 : i32
    return %arg0, %c0_i32, %c0_i32_0 : i32, i32, i32
  }
  func.func @transform_1(%arg0: i32) -> (i32, i32) {
    %c0_i32 = arith.constant 0 : i32
    %c0_i32_0 = arith.constant 0 : i32
    %c0_i32_1 = arith.constant 0 : i32
    return %c0_i32, %c0_i32_0 : i32, i32
  }
  func.func @transform_2(%arg0: i32) -> (i32, i32) {
    %c0_i32 = arith.constant 0 : i32
    %c0_i32_0 = arith.constant 0 : i32
    %c0_i32_1 = arith.constant 0 : i32
    return %c0_i32, %c0_i32_0 : i32, i32
  }
  func.func @transform_3(%arg0: i32) -> (i32, i32) {
    %c0_i32 = arith.constant 0 : i32
    %c0_i32_0 = arith.constant 0 : i32
    %c0_i32_1 = arith.constant 0 : i32
    return %c0_i32, %c0_i32_0 : i32, i32
  }
  func.func @transform_4(%arg0: i32) -> (i32, i32) {
    %c0_i32 = arith.constant 0 : i32
    %c0_i32_0 = arith.constant 0 : i32
    %c0_i32_1 = arith.constant 0 : i32
    return %c0_i32, %c0_i32_0 : i32, i32
  }
  func.func @transform_5(%arg0: i32) -> (i32, i32, i32) {
    %c0_i32 = arith.constant 0 : i32
    %c0_i32_0 = arith.constant 0 : i32
    %c0_i32_1 = arith.constant 0 : i32
    return %arg0, %c0_i32, %c0_i32_0 : i32, i32, i32
  }
}

</mosaic_0001>

<bundles_post_ra>
// kernel: tpu_custom_call.1
= control target key start
LH: loop header
LB: loop body
LE: loop exit
PB: predicated region body
PF: predicated region fallthrough
CT: control target
= control target key end

     0   :  { %10 = vsyncpa [#allocation3], 0  ;;  %s1034_s0 = inlined_call_operand.hbm [shape: f32[2,4,256], index: 0, kind: input, shape index: {}]   ;;  %s1035_s1 = inlined_call_operand.hbm [shape: f32[4,4], index: 1, kind: input, shape index: {}]   ;;  %s1036_s2 = inlined_call_operand.vmem [shape: f32[1,4], index: 2, kind: input, shape index: {}]   ;;  %s1037_s3 = inlined_call_operand.vmem [shape: f32[4,4], index: 3, kind: input, shape index: {}]   ;;  %s1038_s4 = inlined_call_operand.vmem [shape: f32[1,4], index: 4, kind: input, shape index: {}]   ;;  %s1039_s5 = inlined_call_operand.hbm [shape: f32[2,4,256], index: 5, kind: output, shape index: {}]  }
   0x1   :  { %12 = vsyncpa [#allocation3 + $0x1], 0 }
   0x2   :  { %13 = vsyncpa [#allocation6], 0 }
   0x3   :  { %14 = vsyncpa [#allocation4], 0 }
   0x4   :  { %16 = vsyncpa [#allocation4 + $0x1], 0  ;;  %s816_s18 = smov 0   ;;  %s818_s19 = smov 0  }
   0x5   :  { %s820_s20 = smov 0   ;;  %s822_s21 = smov 0  }
   0x6 LB: > { %s837_s22 = sadd.s32 4294967295, %s778_s21   ;;  %s548_s23 = sadd.s32 4294967294, %s778_s21   ;;  %s778_s21 = sphi %s822_s21, %s1063_s21   ;;  %s774_s20 = sphi %s820_s20, %s1062_s20   ;;  %s770_s19 = sphi %s818_s19, %s1061_s19   ;;  %s766_s18 = sphi %s816_s18, %s1060_s18  }
   0x7   : > { %p42_p0 = scmp.ne.s32.totalorder %s770_s19, %s766_s18  ;;  %p1040_p1 = scmp.eq.s32.totalorder %s837_s22, 0 }
   0x8   : > { %p156_p3 = scmp.eq.s32.totalorder %s548_s23, 1  ;;  %p549_p5 = scmp.ge.s32.totalorder %s778_s21, 1 }
   0x9   : > { %p846_p4 = por %p1040_p1, %p42_p0  ;;  %p163_p7 = scmp.lt.s32.totalorder %s778_s21, 3 }
   0xa   : > { %p851_p6 = por %p156_p3, %p42_p0  ;;  %s780_s27 = smov [#allocation5]  }
   0xb   : > { %s1043_s24 = scalar_select %p846_p4, 1, 0 }
   0xc   : > { %s1044_s25 = scalar_select %p851_p6, 1, 0 }
   0xd   : > { %p856_p8 = pnand %p549_p5, %p163_p7  ;;  %s176_s28 = sshll.u32 %s780_s27, 4  ;;  %s177_s28 = int_to_ptr.vmem [resolvable:$true] %s176_s28 }
   0xe   : > { %s864_s29 = sadd.s32 1, %s778_s21   ;;  %s29_s8 = sadd.s32 1, %s774_s20 }
   0xf   : > { %s1045_s26 = scalar_select %p856_p8, 1, 0 }
  0x10   : > { %p593_p10 = pneg %p856_p8  ;;  %s26_s6 = ssub.s32 %s778_s21, %s864_s29 }
  0x11   : > { %p874_p12 = scmp.eq.s32.totalorder %s26_s6, 0  ;;  %s650_s11 = scalar_lea.hbm %s1035_s1, 64 }
  0x12   : > { %p868_p11 = pnand %p593_p10, %p1040_p1  ;;  %p651_p0 = scmp.ne.s32.totalorder %s1035_s1, %s650_s11 }
  0x13   : > { %s1047_s7 = scalar_select %p874_p12, 1, 0 }
  0x14   : > { %p652_p3 = pneg %p868_p11  ;;  %p657_p10 = scmp.lt.u32.totalorder %s650_s11, %s1035_s1 }
  0x16   : > { %p653_p5 = pnand %p652_p3, %p651_p0 }
  0x18   : > { %p654_p7 = pneg %p653_p5 }
  0x1a   : > { %p659_p9 = pnand %p657_p10, %p654_p7 }
  0x1c   : > { %662 = shalt.err (!%p659_p9)
}
  0x1d   : > { %s663_s16 = scalar_lea.vmem %s177_s28, 64  ;;  %p671_p6 = scmp.lt.s32.totalorder %s177_s28, %s177_s28 }
  0x1e   : > { %p664_p1 = scmp.ne.s32.totalorder %s177_s28, %s663_s16  ;;  %p672_p4 = scmp.lt.s32.totalorder %s663_s16, %s663_s16 }
  0x20   : > { %p666_p2 = pnand %p664_p1, %p652_p3  ;;  %p673_p8 = por %p672_p4, %p671_p6 }
  0x22   : > { %p667_p13 = pneg %p666_p2 }
  0x24   : > { %p674_p12 = pnand %p673_p8, %p667_p13 }
  0x26   : > { %677 = shalt.err (!%p674_p12)
}
  0x27   : > { %596 = dma.hbm_to_vmem [thread:$0]  (!%p868_p11), %s1035_s1, 64, %s177_s28, [#allocation6]  }
  0x28   : > { %p1048_p1 = scmp.ne.s32.totalorder %s1047_s7, 0  ;;  %p37_p2 = scmp.eq.s32.totalorder %s778_s21, 0 }
  0x29   : > { %p1049_p4 = scmp.ne.s32.totalorder %s774_s20, %s770_s19  ;;  %p1050_p6 = scmp.eq.s32.totalorder %s837_s22, 1 }
  0x2a   : > { %s900_s27 = scalar_select %p1048_p1, %s774_s20, %s29_s8  }
  0x2b   : > { %p908_p8 = por %p1050_p6, %p1049_p4  ;;  %p606_p9 = scmp.lt.s32.totalorder %s778_s21, 2 }
  0x2c   : > { %s196_s6 = sand.u32 1, %s774_s20   ;;  %p1052_p12 = pmov %p1049_p4 }
  0x2d   : > { %s552_s9 = sshll.u32 %s196_s6, 3  ;;  %s569_s10 = sshll.u32 %s778_s21, 7 }
  0x2e   : > { %p38_p13 = por %p37_p2, %p1052_p12  ;;  %s921_s28 = scalar_lea.hbm %s1034_s0, %s569_s10 }
  0x2f   : > { %s200_s7 = scalar_lea.vmem [#allocation2], %s552_s9  ;;  %s197_s14 = scalar_lea.sflag [#allocation3], %s196_s6 }
  0x30   : > { %s208_s8 = sshll.u32 %s200_s7, 4  ;;  %p923_p11 = pnand %p606_p9, %p38_p13  ;;  %s927_s8 = int_to_ptr.vmem [resolvable:$true] %s208_s8 }
  0x31   : > { %s678_s15 = scalar_lea.hbm %s921_s28, 128  ;;  %s683_s23 = scalar_lea.hbm %s1034_s0, 256 }
  0x32   : > { %p679_p0 = scmp.ne.s32.totalorder %s921_s28, %s678_s15  ;;  %p680_p3 = pneg %p923_p11 }
  0x33   : > { %p684_p10 = scmp.lt.u32.totalorder %s921_s28, %s1034_s0  ;;  %p685_p1 = scmp.lt.u32.totalorder %s683_s23, %s678_s15 }
  0x34   : > { %p681_p5 = pnand %p680_p3, %p679_p0  ;;  %p687_p4 = scmp.lt.u32.totalorder %s678_s15, %s921_s28 }
  0x35   : > { %p686_p2 = por %p685_p1, %p684_p10 }
  0x36   : > { %p682_p7 = pneg %p681_p5 }
  0x37   : > { %p688_p6 = por %p687_p4, %p686_p2 }
  0x39   : > { %p689_p9 = pnand %p688_p6, %p682_p7 }
  0x3b   : > { %692 = shalt.err (!%p689_p9)
}
  0x3c   : > { %s693_s6 = scalar_lea.vmem %s927_s8, 128  ;;  %s781_s11 = smov [#allocation2]  }
  0x3d   : > { %p694_p12 = scmp.ne.s32.totalorder %s927_s8, %s693_s6  ;;  %s698_s12 = sshll.u32 %s781_s11, 4  ;;  %s699_s12 = int_to_ptr.vmem [resolvable:$false] %s698_s12 }
  0x3e   : > { %s700_s7 = scalar_lea.vmem %s699_s12, 256  ;;  %p701_p5 = scmp.lt.s32.totalorder %s927_s8, %s699_s12 }
  0x3f   : > { %p696_p13 = pnand %p694_p12, %p680_p3  ;;  %p702_p10 = scmp.lt.s32.totalorder %s700_s7, %s693_s6 }
  0x41   : > { %p697_p0 = pneg %p696_p13  ;;  %p703_p1 = por %p702_p10, %p701_p5 }
  0x43   : > { %p704_p2 = pnand %p703_p1, %p697_p0 }
  0x45   : > { %707 = shalt.err (!%p704_p2)
}
  0x46   : > { %600 = dma.hbm_to_vmem [thread:$0]  (!%p923_p11), %s921_s28, 128, %s927_s8, %s197_s14  }
  0x47   : > { %p1054_p7 = scmp.ne.s32.totalorder %s1045_s26, 0 }
  0x48   : > { %s957_s15 = sand.u32 (!%p1054_p7), 1, %s770_s19   ;;  %p1055_p3 = scmp.ne.s32.totalorder (!%p1054_p7), %s1043_s24, 0 }
  0x49   : > { %217 = sbr.rel (%p1054_p7) target bundleno = 827 (0x33b), region = 40  ;;  %s556_s16 = sshll.u32 (!%p1054_p7), %s957_s15, 3 }
  0x4a   : > { %s220_s17 = scalar_lea.sflag (!%p1054_p7), [#allocation3], %s957_s15  ;;  %s223_s23 = scalar_lea.vmem (!%p1054_p7), [#allocation2], %s556_s16 }
  0x50   : > { %753 = dma.done.wait (%p1055_p3), %s220_s17, 128  }
  0x51   : > { %755 = vsyncadd (%p1055_p3), %s220_s17, 4294967168  ;;  %p1056_p11 = scmp.eq.s32.totalorder %s837_s22, 0 }
  0x53   : > { %757 = dma.done.wait (%p1056_p11), [#allocation6], 64   ;;  %p1057_p4 = pmov %p1056_p11 }
  0x54   : > { %vm258_vm0 = vcmask 1043456   ;;  %v254_v0 = vld [vmem:[%s223_s23] sm:$0xff]  ;;  %v782_v5 = vmov 0.0   ;;  %v264_v6 = vld [vmem:[#allocation5] sm:$0xf]  ;;  %vm783_vm1 = vmmov 0   ;;  %v267_v7 = vlaneseq }
  0x55   : > { %759 = vsyncadd (%p1057_p4), [#allocation6], 4294967232  ;;  %v256_v1 = vcombine.high %v254_v0, %v254_v0  ;;  %v259_v2 = vsel %vm258_vm0, %v254_v0, 0.0  ;;  %575 = vmatprep.subr.mxu0 %v782_v5  ;;  %580 = vmatprep.subr.mxu1 %v782_v5  ;;  %vm273_vm2 = vcmask 31744   ;;  %v350_v13 = vld [vmem:[%s1037_s3] sm:$0xf] }
  0x56   : > { %576 = vmatpush3.msk.msra.mxu0 %vm258_vm0, %v264_v6  ;;  %577 = vmatprep.mubr.msk.f32.mxu0 %vm783_vm1, %v782_v5  ;;  %v268_v8 = vand.u32 127, %v267_v7  ;;  %v270_v9 = vshrl.u32 %v267_v7, 7  ;;  %v265_v14 = vld [vmem:[%s1036_s2] sm:$0x1]  ;;  %v784_v30 = vmov 839922192  }
  0x57   : > { %v260_v3 = vsel %vm258_vm0, %v256_v1, 0.0  ;;  %582 = vmatprep.mubr.msk.f32.mxu1 %vm783_vm1, %v782_v5  ;;  %581 = vmatpush3.msk.msra.mxu1 %vm258_vm0, %v350_v13  ;;  %v351_v19 = vld [vmem:[%s1038_s4] sm:$0x1]  ;;  %v444_v31 = vunpack.c.l.s4 %v784_v30  ;;  %s570_s9 = sshll.u32 %s837_s22, 7  ;;  %s253_s10 = scalar_lea.vmem [#allocation7], %s556_s16 }
  0x58   : > { %v261_v4 = vadd.f32 %v260_v3, %v259_v2  ;;  %v271_v10 = vsub.s32 %v268_v8, %v270_v9  ;;  %v437_v26 = vsub.s32 0, %v270_v9  ;;  %s468_s6 = sshll.u32 %s253_s10, 4  ;;  %s990_s7 = scalar_lea.hbm %s1039_s5, %s570_s9  ;;  %s992_s6 = int_to_ptr.vmem [resolvable:$true] %s468_s6 }
  0x59   : > { %v445_v32 = vunpack.c.0.s8 %v444_v31  ;;  %s454_s17 = scalar_lea.sflag [#allocation4], %s957_s15  ;;  %s708_s23 = scalar_lea.vmem %s992_s6, 128 }
  0x5a   : > { %262 = vadd.xlane.f32.xlu0 %v261_v4  ;;  %p709_p6 = scmp.ne.s32.totalorder %s992_s6, %s708_s23  ;;  %s785_s22 = smov [#allocation7]  }
  0x5b   : > { %v448_v33 = vsub.s32 %v445_v32, %v270_v9  ;;  %s712_s16 = sshll.u32 %s785_s22, 4  ;;  %s713_s16 = int_to_ptr.vmem [resolvable:$false] %s712_s16 }
  0x5c   : > { %p710_p9 = pnand %p709_p6, %p908_p8  ;;  %s714_s24 = scalar_lea.vmem %s713_s16, 256 }
  0x5d   : > { %p715_p13 = scmp.lt.s32.totalorder %s992_s6, %s713_s16  ;;  %p716_p0 = scmp.lt.s32.totalorder %s714_s24, %s708_s23 }
  0x5e   : > { %p711_p12 = pneg %p710_p9 }
  0x5f   : > { %p717_p5 = por %p716_p0, %p715_p13 }
  0x61   : > { %p718_p10 = pnand %p717_p5, %p711_p12 }
  0xe7   : > { %v263_v11 = vpop.xlane.xlu0 %262 }
  0xe8   : > { %v272_v12 = vrot.slane %v263_v11, %v271_v10 }
  0xea   : > { %578 = vmatmul.mubr.msk.f32.vlgmr.msra.gmra.mrb[0].mxu0 %vm273_vm2, %v272_v12 }
 0x1bd   : > { %v345_v15 = vpop.f32.mrb[0].mxu0 }
 0x1be   : > { %v346_v16 = vadd.f32 %v345_v15, %v265_v14  ;;  %v579_v17 = vpop.f32.mrb[1].mxu0 }
 0x1c0   : > { %v349_v18 = vmax.f32 %v346_v16, 0.0 }
 0x1c2   : > { %583 = vmatmul.mubr.msk.f32.vlgmr.msra.gmra.mrb[0].mxu1 %vm273_vm2, %v349_v18 }
 0x295   : > { %v424_v20 = vpop.f32.mrb[0].mxu1 }
 0x296   : > { %v425_v21 = vadd.f32 %v424_v20, %v351_v19  ;;  %v584_v22 = vpop.f32.mrb[1].mxu1 }
 0x298   : > { %v563_v23 = vmul.f32 -1.442695, %v425_v21 }
 0x29a   : > { %646 = vpow2.f32 %v563_v23 }
 0x2a4   : > { %v647_v24 = vpop.eup %646 }
 0x2a5   : > { %v431_v25 = vadd.f32 1.0, %v647_v24 }
 0x2a7   : > { %648 = vrcp.f32 %v431_v25 }
 0x2b1   : > { %v649_v27 = vpop.eup %648 }
 0x2b2   : > { %v434_v28 = vadd.f32 1.0, %v649_v27 }
 0x2b4   : > { %v438_v29 = vrot.slane %v434_v28, %v437_v26 }
 0x2b6   : > { %440 = vbcast.lane.b32.xlu0 %v438_v29, 256 }
 0x328   : > { %v441_v34 = vpop.permute.xlu0 %440 }
 0x329   : > { %v449_v35 = vrot.slane %v441_v34, %v448_v33 }
 0x32b   : > { %v451_v36 = vmul.f32 %v449_v35, %v254_v0 }
 0x32d   : > { %452 = vst [vmem:[%s253_s10] sm:$0xff] %v451_v36 }
 0x32e   : > { %721 = shalt.err (!%p718_p10)
}
 0x32f   : > { %s722_s15 = scalar_lea.hbm %s990_s7, 128  ;;  %s726_s8 = scalar_lea.hbm %s1039_s5, 256 }
 0x330   : > { %p723_p1 = scmp.ne.s32.totalorder %s990_s7, %s722_s15  ;;  %p727_p3 = scmp.lt.u32.totalorder %s990_s7, %s1039_s5 }
 0x331   : > { %p728_p11 = scmp.lt.u32.totalorder %s726_s8, %s722_s15  ;;  %p730_p6 = scmp.lt.u32.totalorder %s722_s15, %s990_s7 }
 0x332   : > { %p724_p2 = pnand %p723_p1, %p908_p8 }
 0x333   : > { %p729_p4 = por %p728_p11, %p727_p3 }
 0x334   : > { %p725_p7 = pneg %p724_p2 }
 0x335   : > { %p731_p9 = por %p730_p6, %p729_p4 }
 0x337   : > { %p732_p12 = pnand %p731_p9, %p725_p7 }
 0x339   : > { %735 = shalt.err (!%p732_p12)
}
 0x33a   : > { %591 = dma.vmem_to_hbm [thread:$0]  (%p908_p8), %s992_s6, 128, %s990_s7, %s454_s17  }
 0x33b PF: > { %s480_s9 = sand.u32 1, %s766_s18   ;;  %p1058_p13 = scmp.ne.s32.totalorder %s1044_s25, 0 }
 0x33c   : > { %p1059_p0 = scmp.ge.s32.totalorder %s778_s21, 2  ;;  %s481_s10 = scalar_lea.sflag [#allocation4], %s480_s9 }
 0x33e   : > { %p602_p5 = pnand %p1059_p0, %p1058_p13 }
 0x340   : > { %761 = dma.done.wait (!%p602_p5), %s481_s10, 128  }
 0x341   : > { %763 = vsyncadd (!%p602_p5), %s481_s10, 4294967168  ;;  %p19_p10 = scmp.ge.s32.totalorder %s864_s29, 4   ;;  %s1060_s18 = smov %s770_s19 }
 0x342   : > { %s1061_s19 = smov %s774_s20  ;;  %s1062_s20 = smov %s900_s27 }
 0x343   : > { %s1063_s21 = smov %s864_s29  ;;  %21 = sbr.rel (!%p19_p10) target bundleno = 6 (0x6), region = 89 }
 0x34a   :  { %486 = vsyncpa [#allocation3], 1 }
 0x34b   :  { %488 = vsyncpa [#allocation3 + $0x1], 1 }
 0x34c   :  { %489 = vsyncpa [#allocation6], 1 }
 0x34d   :  { %490 = vsyncpa [#allocation4], 1 }
 0x34e   :  { %492 = vsyncpa [#allocation4 + $0x1], 1 }

</bundles_post_ra>
